<compile_context>
chip_gen: v6e
topology: v6e:2x2x1
jax: 0.10.0
libtpu: 0.0.40
codegen_flags: <defaults>
</compile_context>

<pallas_src>
import functools

import jax
import jax.numpy as jnp
from jax import lax
from jax.experimental import pallas as pl
from jax.experimental.pallas import tpu as pltpu

NOISY_SIGMA_INIT = 2.5

_VMEM_TILE_BUDGET = 40 * 1024 * 1024   # conservative: v7x has 64 MiB physical VMEM


# ---------------------------------------------------------------------------
# Kernels
# ---------------------------------------------------------------------------
def _noisy_linear_train_kernel(x_ref, wmu_ref, wsig_ref, eps_in_ref,
                               eps_out_ref, beff_ref, o_ref, acc_ref,
                               *, compute_dtype):
    """Training path: y = x @ w_mu.T + eps_out ⊙ ((x ⊙ eps_in) @ w_sigma.T) + b_eff.

    The factorized weight noise is never materialized as a (tn, tk) matrix —
    it is folded into the activations (x ⊙ eps_in) and the epilogue (⊙ eps_out).
    """
    k = pl.program_id(2)

    @pl.when(k == 0)
    def _():
        acc_ref[...] = jnp.zeros_like(acc_ref)

    dn = (((1,), (1,)), ((), ()))          # contract last dim of x with last dim of w
    x = x_ref[...]                         # (tb, tk) f32
    xs = x * eps_in_ref[...]               # (tb, tk) f32, cheap VPU scale

    acc_ref[...] += (
        lax.dot_general(x.astype(compute_dtype), wmu_ref[...], dn,
                        preferred_element_type=jnp.float32)
        + eps_out_ref[...] * lax.dot_general(xs.astype(compute_dtype),
                                             wsig_ref[...], dn,
                                             preferred_element_type=jnp.float32))

    @pl.when(k == pl.num_programs(2) - 1)
    def _():
        o_ref[...] = (acc_ref[...] + beff_ref[...]).astype(o_ref.dtype)


def _noisy_linear_eval_kernel(x_ref, wmu_ref, bmu_ref, o_ref, acc_ref,
                              *, compute_dtype):
    """Eval path: y = x @ w_mu.T + b_mu (mu-only, no sigma/epsilon traffic)."""
    k = pl.program_id(2)

    @pl.when(k == 0)
    def _():
        acc_ref[...] = jnp.zeros_like(acc_ref)

    acc_ref[...] += lax.dot_general(
        x_ref[...].astype(compute_dtype), wmu_ref[...],
        (((1,), (1,)), ((), ())),
        preferred_element_type=jnp.float32)

    @pl.when(k == pl.num_programs(2) - 1)
    def _():
        o_ref[...] = (acc_ref[...] + bmu_ref[...]).astype(o_ref.dtype)


# ---------------------------------------------------------------------------
# Tiling helpers
# ---------------------------------------------------------------------------
def _round_up(v, m):
    return ((v + m - 1) // m) * m


def _largest_divisor_tile(dim, candidates):
    for c in candidates:
        if c <= dim and dim % c == 0:
            return c
    return 128


def _vmem_estimate(tb, tn, tk, wbytes, n_wmats):
    x_bytes = tb * tk * 4 * 2                       # x, double-buffered
    w_bytes = tn * tk * wbytes * 2 * n_wmats        # weight matrices, double-buffered
    o_bytes = tb * tn * 4 * 2                       # output, double-buffered
    acc_bytes = tb * tn * 4                         # f32 accumulator scratch
    vec_bytes = 8 * (tk + 2 * tn) * 4 * 2           # (1, tk)/(1, tn) streams (sublane-padded)
    return x_bytes + w_bytes + o_bytes + acc_bytes + vec_bytes


def _choose_tiles(B, N, K, wbytes, n_wmats):
    # out-feature tile
    tn = 256 if N % 256 == 0 else 128
    # reduction tile: collapse the k axis whenever the reduction is small.
    if K <= 2048:
        tk = K
    else:
        tk = _largest_divisor_tile(K, (2048, 1024, 512, 256, 128))
    # batch tile: one tile for the whole batch when VMEM allows, so the weight
    # matrices are streamed from HBM exactly once per call.
    Bp8 = _round_up(B, 8)
    if _vmem_estimate(Bp8, tn, tk, wbytes, n_wmats) <= _VMEM_TILE_BUDGET:
        tb, Bp = Bp8, Bp8
    else:
        tb = 512
        while tb > 8 and _vmem_estimate(tb, tn, tk, wbytes, n_wmats) > _VMEM_TILE_BUDGET:
            tb //= 2
        Bp = _round_up(B, tb)                       # pad only to the chosen tile
    # v7x has 2 TensorCores: ensure a parallel grid axis has >= 2 iterations.
    if Bp // tb == 1 and N // tn < 2 and N >= 256 and tn != 128:
        tn = 128
    return tb, tn, tk, Bp


# ---------------------------------------------------------------------------
# Parameter preparation (NOT in the per-call hot path)
# ---------------------------------------------------------------------------
def prepare_noisy_linear_params(params, weights_dtype=jnp.bfloat16):
    """Pad to lane/sublane-aligned shapes and cast weights for streaming.

    Call this once per reset_noise() / parameter update.  Keeping the padded +
    casted copies out of the forward removes a full HBM read+write of both
    weight matrices from every call and lets the kernel stream bf16 weights.
    """
    wmu, wsig = params["weight_mu"], params["weight_sigma"]
    bmu, bsig = params["bias_mu"], params["bias_sigma"]
    eps_in, eps_out = params["eps_in"], params["eps_out"]
    out_f, in_f = wmu.shape
    K = _round_up(in_f, 128)
    N = _round_up(out_f, 128)
    pad_k = (0, K - in_f)
    pad_n = (0, N - out_f)

    eps_out_row = jnp.pad(eps_out, pad_n).astype(jnp.float32).reshape(1, N)
    bmu_row = jnp.pad(bmu, pad_n).astype(jnp.float32).reshape(1, N)
    bsig_row = jnp.pad(bsig, pad_n).astype(jnp.float32).reshape(1, N)
    beff_row = bmu_row + bsig_row * eps_out_row      # effective training bias

    return dict(
        in_f=in_f, out_f=out_f, K=K, N=N, weights_dtype=weights_dtype,
        weight_mu=jnp.pad(wmu, (pad_n, pad_k)).astype(weights_dtype),
        weight_sigma=jnp.pad(wsig, (pad_n, pad_k)).astype(weights_dtype),
        eps_in=jnp.pad(eps_in, pad_k).astype(jnp.float32).reshape(1, K),
        eps_out=eps_out_row,
        bias_mu=bmu_row,
        bias_eff=beff_row,
    )


# ---------------------------------------------------------------------------
# Forward wrapper
# ---------------------------------------------------------------------------
def noisy_linear_forward(x, prepared, training=True):
    """Pallas TPU implementation of NoisyLinear.forward.

    training: y = x @ (w_mu + w_sig * outer(eps_out, eps_in)).T
                  + (b_mu + b_sig * eps_out)
    eval:     y = x @ w_mu.T + b_mu
    """
    B, in_f = x.shape
    assert in_f == prepared["in_f"], "input feature dim mismatch"
    K, N, out_f = prepared["K"], prepared["N"], prepared["out_f"]
    wdtype = prepared["weights_dtype"]
    wbytes = jnp.dtype(wdtype).itemsize
    n_wmats = 2 if training else 1

    tb, tn, tk, Bp = _choose_tiles(B, N, K, wbytes, n_wmats)
    grid = (Bp // tb, N // tn, K // tk)    # (batch, out, reduction) — reduction last

    # Only the (small) activation tensor is padded per call; zero K-columns of x
    # null any padded-weight contribution, padded rows are sliced off below.
    if Bp == B and K == in_f:
        xp = x
    else:
        xp = jnp.pad(x, ((0, Bp - B), (0, K - in_f)))

    x_spec = pl.BlockSpec((tb, tk), lambda b, n, k: (b, k))
    # TODO(synk): if a profile shows exposed weight DMA, set
    # pipeline_mode=pl.Buffered(3) on the weight specs.
    w_spec = pl.BlockSpec((tn, tk), lambda b, n, k: (n, k))
    row_k_spec = pl.BlockSpec((1, tk), lambda b, n, k: (0, k))
    row_n_spec = pl.BlockSpec((1, tn), lambda b, n, k: (0, n))
    out_spec = pl.BlockSpec((tb, tn), lambda b, n, k: (b, n))
    scratch = [pltpu.VMEM((tb, tn), jnp.float32)]
    cp = pltpu.CompilerParams(
        dimension_semantics=("parallel", "parallel", "arbitrary"),
        vmem_limit_bytes=48 * 1024 * 1024)   # <= ~48 MiB keeps v7x (64 MiB VMEM) safe
    out_shape = jax.ShapeDtypeStruct((Bp, N), x.dtype)

    if training:
        kernel = functools.partial(_noisy_linear_train_kernel,
                                   compute_dtype=wdtype)
        grid_spec = pltpu.PrefetchScalarGridSpec(
            num_scalar_prefetch=0, grid=grid,
            in_specs=[
                x_spec,        # x            (tb, tk)
                w_spec,        # w_mu         (tn, tk)
                w_spec,        # w_sigma      (tn, tk)
                row_k_spec,    # eps_in       (1, tk)
                row_n_spec,    # eps_out      (1, tn)
                row_n_spec,    # b_mu + b_sigma*eps_out   (1, tn)
            ],
            out_specs=out_spec,
            scratch_shapes=scratch)
        yp = pl.pallas_call(
            kernel, out_shape=out_shape, grid_spec=grid_spec,
            compiler_params=cp,
        )(xp, prepared["weight_mu"], prepared["weight_sigma"],
          prepared["eps_in"], prepared["eps_out"], prepared["bias_eff"])
    else:
        kernel = functools.partial(_noisy_linear_eval_kernel,
                                   compute_dtype=wdtype)
        grid_spec = pltpu.PrefetchScalarGridSpec(
            num_scalar_prefetch=0, grid=grid,
            in_specs=[x_spec, w_spec, row_n_spec],
            out_specs=out_spec,
            scratch_shapes=scratch)
        yp = pl.pallas_call(
            kernel, out_shape=out_shape, grid_spec=grid_spec,
            compiler_params=cp,
        )(xp, prepared["weight_mu"], prepared["bias_mu"])

    return yp[:B, :out_f]


# ---------------------------------------------------------------------------
# Parameter init (mirrors reset_parameters / reset_noise, factorized noise)
# ---------------------------------------------------------------------------
def init_noisy_linear_params(key, in_f, out_f, sigma_init=NOISY_SIGMA_INIT):
    k_wmu, k_bmu, k_ein, k_eout = jax.random.split(key, 4)
    bound = 1.0 / (in_f ** 0.5)

    weight_mu = jax.random.uniform(k_wmu, (out_f, in_f), jnp.float32, -bound, bound)
    weight_sigma = jnp.full((out_f, in_f), sigma_init / (in_f ** 0.5), jnp.float32)
    bias_mu = jax.random.uniform(k_bmu, (out_f,), jnp.float32, -bound, bound)
    bias_sigma = jnp.full((out_f,), sigma_init / (out_f ** 0.5), jnp.float32)

    f = lambda v: jnp.sign(v) * jnp.sqrt(jnp.abs(v))
    eps_in = f(jax.random.normal(k_ein, (in_f,), jnp.float32))
    eps_out = f(jax.random.normal(k_eout, (out_f,), jnp.float32))
    # The full weight_epsilon = outer(eps_out, eps_in) is intentionally NOT
    # materialized; the kernel folds the factors into x and the epilogue.
    return dict(weight_mu=weight_mu, weight_sigma=weight_sigma,
                bias_mu=bias_mu, bias_sigma=bias_sigma,
                eps_in=eps_in, eps_out=eps_out)


def _reference(x, p, training):
    if training:
        w = p["weight_mu"] + p["weight_sigma"] * jnp.outer(p["eps_out"], p["eps_in"])
        b = p["bias_mu"] + p["bias_sigma"] * p["eps_out"]
    else:
        w, b = p["weight_mu"], p["bias_mu"]
    return jnp.dot(x, w.T, precision=lax.Precision.HIGHEST) + b


if __name__ == "__main__":
    key = jax.random.PRNGKey(0)
    k_x, k_p, k_x2, k_p2 = jax.random.split(key, 4)

    # --- Small Rainbow-DQN-head shape: exercises padding + slicing paths. ---
    B, in_f, out_f = 2, 32, 16
    x = jax.random.normal(k_x, (B, in_f), jnp.float32)
    p = init_noisy_linear_params(k_p, in_f, out_f)

    # f32-stored weights: exact module numerics.
    prep_f32 = prepare_noisy_linear_params(p, weights_dtype=jnp.float32)
    y_tr = noisy_linear_forward(x, prep_f32, training=True)
    y_ev = noisy_linear_forward(x, prep_f32, training=False)
    jax.block_until_ready((y_tr, y_ev))
    assert jnp.allclose(y_tr, _reference(x, p, True), atol=1e-3, rtol=1e-3), \
        "training-path (f32) mismatch vs reference"
    assert jnp.allclose(y_ev, _reference(x, p, False), atol=1e-3, rtol=1e-3), \
        "eval-path (f32) mismatch vs reference"

    # bf16-streamed weights (default): ~2x less weight HBM traffic.
    prep_bf16 = prepare_noisy_linear_params(p)
    y_tr16 = noisy_linear_forward(x, prep_bf16, training=True)
    jax.block_until_ready(y_tr16)
    assert jnp.allclose(y_tr16, _reference(x, p, True), atol=5e-2, rtol=5e-2), \
        "training-path (bf16) mismatch vs reference"

    # --- Multi-tile case: (batch, out, k) grid with k-accumulation, ragged K/N. ---
    B2, in2, out2 = 32, 3000, 383
    x2 = jax.random.normal(k_x2, (B2, in2), jnp.float32)
    p2 = init_noisy_linear_params(k_p2, in2, out2)

    prep2_f32 = prepare_noisy_linear_params(p2, weights_dtype=jnp.float32)
    y2 = noisy_linear_forward(x2, prep2_f32, training=True)
    jax.block_until_ready(y2)
    assert jnp.allclose(y2, _reference(x2, p2, True), atol=3e-2, rtol=3e-2), \
        "multi-tile training-path (f32) mismatch vs reference"

    prep2_bf16 = prepare_noisy_linear_params(p2)
    y2_16 = noisy_linear_forward(x2, prep2_bf16, training=True)
    jax.block_until_ready(y2_16)
    assert jnp.allclose(y2_16, _reference(x2, p2, True), atol=6e-2, rtol=6e-2), \
        "multi-tile training-path (bf16) mismatch vs reference"

    print("KERNEL_OK")
</pallas_src>

<mosaic_0001>
module attributes {stable_mosaic.version = 11 : i64} {
  func.func @_noisy_linear_train_kernel(%arg0: i32, %arg1: i32, %arg2: i32, %arg3: memref<8x128xf32, #tpu.memory_space<vmem>>, %arg4: memref<128x128xf32, #tpu.memory_space<vmem>>, %arg5: memref<128x128xf32, #tpu.memory_space<vmem>>, %arg6: memref<1x128xf32, #tpu.memory_space<vmem>>, %arg7: memref<1x128xf32, #tpu.memory_space<vmem>>, %arg8: memref<1x128xf32, #tpu.memory_space<vmem>>, %arg9: memref<8x128xf32, #tpu.memory_space<vmem>>, %arg10: memref<8x128xf32, #tpu.memory_space<vmem>>) attributes {dimension_semantics = [#tpu.dimension_semantics<parallel>, #tpu.dimension_semantics<parallel>, #tpu.dimension_semantics<arbitrary>], iteration_bounds = array<i64: 1, 1, 1>, scalar_prefetch = 0 : i64, scratch_operands = 1 : i64, tpu.core_type = #tpu.core_type<tc>, window_params = [{transform_indices = @transform_0, window_bounds = array<i64: 8, 128>}, {transform_indices = @transform_1, window_bounds = array<i64: 128, 128>}, {transform_indices = @transform_2, window_bounds = array<i64: 128, 128>}, {transform_indices = @transform_3, window_bounds = array<i64: 1, 128>}, {transform_indices = @transform_4, window_bounds = array<i64: 1, 128>}, {transform_indices = @transform_5, window_bounds = array<i64: 1, 128>}, {transform_indices = @transform_6, window_bounds = array<i64: 8, 128>}]} {
    %c0_i32 = arith.constant 0 : i32
    %0 = arith.cmpi eq, %arg2, %c0_i32 : i32
    %1 = arith.extui %0 : i1 to i32
    %c0_i32_0 = arith.constant 0 : i32
    %2 = arith.cmpi ne, %1, %c0_i32_0 : i32
    scf.if %2 {
      %cst_17 = arith.constant 0.000000e+00 : f32
      %21 = vector.broadcast %cst_17 : f32 to vector<8x128xf32>
      %c0_18 = arith.constant 0 : index
      %c0_19 = arith.constant 0 : index
      %22 = vector.load %arg10[%c0_18, %c0_19] : memref<8x128xf32, #tpu.memory_space<vmem>>, vector<8x128xf32>
      tpu.vector_store %arg10[%c0_18, %c0_19], %21 {strides = array<i32>} : memref<8x128xf32, #tpu.memory_space<vmem>>, vector<8x128xf32>,
    } else {
    }
    %c0 = arith.constant 0 : index
    %c0_1 = arith.constant 0 : index
    %3 = vector.load %arg3[%c0, %c0_1] : memref<8x128xf32, #tpu.memory_space<vmem>>, vector<8x128xf32>
    %c0_2 = arith.constant 0 : index
    %c0_3 = arith.constant 0 : index
    %4 = vector.load %arg6[%c0_2, %c0_3] : memref<1x128xf32, #tpu.memory_space<vmem>>, vector<1x128xf32>
    %5 = vector.broadcast %4 : vector<1x128xf32> to vector<8x128xf32>
    %6 = arith.mulf %3, %5 : vector<8x128xf32>
    %c0_4 = arith.constant 0 : index
    %c0_5 = arith.constant 0 : index
    %7 = vector.load %arg10[%c0_4, %c0_5] : memref<8x128xf32, #tpu.memory_space<vmem>>, vector<8x128xf32>
    %c0_6 = arith.constant 0 : index
    %c0_7 = arith.constant 0 : index
    %8 = vector.load %arg4[%c0_6, %c0_7] : memref<128x128xf32, #tpu.memory_space<vmem>>, vector<128x128xf32>
    %cst = arith.constant dense<0.000000e+00> : vector<8x128xf32>
    %9 = tpu.matmul %3, %8, %cst {dimension_numbers = #tpu.dot_dimension_numbers<[1], [1], [0], [0], [0, 0, 1, 0], [], []>} : vector<8x128xf32>, vector<128x128xf32>, vector<8x128xf32> -> vector<8x128xf32>
    %c0_8 = arith.constant 0 : index
    %c0_9 = arith.constant 0 : index
    %10 = vector.load %arg7[%c0_8, %c0_9] : memref<1x128xf32, #tpu.memory_space<vmem>>, vector<1x128xf32>
    %c0_10 = arith.constant 0 : index
    %c0_11 = arith.constant 0 : index
    %11 = vector.load %arg5[%c0_10, %c0_11] : memref<128x128xf32, #tpu.memory_space<vmem>>, vector<128x128xf32>
    %cst_12 = arith.constant dense<0.000000e+00> : vector<8x128xf32>
    %12 = tpu.matmul %6, %11, %cst_12 {dimension_numbers = #tpu.dot_dimension_numbers<[1], [1], [0], [0], [0, 0, 1, 0], [], []>} : vector<8x128xf32>, vector<128x128xf32>, vector<8x128xf32> -> vector<8x128xf32>
    %13 = vector.broadcast %10 : vector<1x128xf32> to vector<8x128xf32>
    %14 = arith.mulf %13, %12 : vector<8x128xf32>
    %15 = arith.addf %9, %14 : vector<8x128xf32>
    %16 = arith.addf %7, %15 : vector<8x128xf32>
    %c0_13 = arith.constant 0 : index
    %c0_14 = arith.constant 0 : index
    %17 = vector.load %arg10[%c0_13, %c0_14] : memref<8x128xf32, #tpu.memory_space<vmem>>, vector<8x128xf32>
    tpu.vector_store %arg10[%c0_13, %c0_14], %16 {strides = array<i32>} : memref<8x128xf32, #tpu.memory_space<vmem>>, vector<8x128xf32>,
    %c0_i32_15 = arith.constant 0 : i32
    %18 = arith.cmpi eq, %arg2, %c0_i32_15 : i32
    %19 = arith.extui %18 : i1 to i32
    %c0_i32_16 = arith.constant 0 : i32
    %20 = arith.cmpi ne, %19, %c0_i32_16 : i32
    scf.if %20 {
      %c0_17 = arith.constant 0 : index
      %c0_18 = arith.constant 0 : index
      %21 = vector.load %arg10[%c0_17, %c0_18] : memref<8x128xf32, #tpu.memory_space<vmem>>, vector<8x128xf32>
      %c0_19 = arith.constant 0 : index
      %c0_20 = arith.constant 0 : index
      %22 = vector.load %arg8[%c0_19, %c0_20] : memref<1x128xf32, #tpu.memory_space<vmem>>, vector<1x128xf32>
      %23 = vector.broadcast %22 : vector<1x128xf32> to vector<8x128xf32>
      %24 = arith.addf %21, %23 : vector<8x128xf32>
      %c0_21 = arith.constant 0 : index
      %c0_22 = arith.constant 0 : index
      %25 = vector.load %arg9[%c0_21, %c0_22] : memref<8x128xf32, #tpu.memory_space<vmem>>, vector<8x128xf32>
      tpu.vector_store %arg9[%c0_21, %c0_22], %24 {strides = array<i32>} : memref<8x128xf32, #tpu.memory_space<vmem>>, vector<8x128xf32>,
    } else {
    }
    return
  }
  func.func @transform_0(%arg0: i32, %arg1: i32, %arg2: i32) -> (i32, i32) {
    %c0_i32 = arith.constant 0 : i32
    return %arg0, %arg2 : i32, i32
  }
  func.func @transform_1(%arg0: i32, %arg1: i32, %arg2: i32) -> (i32, i32) {
    %c0_i32 = arith.constant 0 : i32
    return %arg1, %arg2 : i32, i32
  }
  func.func @transform_2(%arg0: i32, %arg1: i32, %arg2: i32) -> (i32, i32) {
    %c0_i32 = arith.constant 0 : i32
    return %arg1, %arg2 : i32, i32
  }
  func.func @transform_3(%arg0: i32, %arg1: i32, %arg2: i32) -> (i32, i32) {
    %c0_i32 = arith.constant 0 : i32
    %c0_i32_0 = arith.constant 0 : i32
    return %c0_i32, %arg2 : i32, i32
  }
  func.func @transform_4(%arg0: i32, %arg1: i32, %arg2: i32) -> (i32, i32) {
    %c0_i32 = arith.constant 0 : i32
    %c0_i32_0 = arith.constant 0 : i32
    return %c0_i32, %arg1 : i32, i32
  }
  func.func @transform_5(%arg0: i32, %arg1: i32, %arg2: i32) -> (i32, i32) {
    %c0_i32 = arith.constant 0 : i32
    %c0_i32_0 = arith.constant 0 : i32
    return %c0_i32, %arg1 : i32, i32
  }
  func.func @transform_6(%arg0: i32, %arg1: i32, %arg2: i32) -> (i32, i32) {
    %c0_i32 = arith.constant 0 : i32
    return %arg0, %arg1 : i32, i32
  }
}

</mosaic_0001>

<bundles_post_ra>
// kernel: tpu_custom_call.1
= control target key start
LH: loop header
LB: loop body
LE: loop exit
PB: predicated region body
PF: predicated region fallthrough
CT: control target
= control target key end

     0   :  { %11 = vsyncpa [#allocation4], 0  ;;  %s588_s0 = inlined_call_operand.hbm [shape: f32[8,128], index: 0, kind: input, shape index: {}]   ;;  %s589_s1 = inlined_call_operand.hbm [shape: f32[128,128], index: 1, kind: input, shape index: {}]   ;;  %s590_s2 = inlined_call_operand.hbm [shape: f32[128,128], index: 2, kind: input, shape index: {}]   ;;  %s591_s3 = inlined_call_operand.vmem [shape: f32[1,128], index: 3, kind: input, shape index: {}]   ;;  %s592_s4 = inlined_call_operand.vmem [shape: f32[1,128], index: 4, kind: input, shape index: {}]   ;;  %s593_s5 = inlined_call_operand.vmem [shape: f32[1,128], index: 5, kind: input, shape index: {}]   ;;  %s594_s6 = inlined_call_operand.hbm [shape: f32[8,128], index: 6, kind: output, shape index: {}]  }
   0x1   :  { %12 = vsyncpa [#allocation7], 0 }
   0x2   :  { %13 = vsyncpa [#allocation5], 0  ;;  %s490_s21 = smov [#allocation6]  }
   0x3   :  { %s29_s22 = sshll.u32 %s490_s21, 4  ;;  %s30_s22 = int_to_ptr.vmem [resolvable:$true] %s29_s22 }
   0x4   :  { %s412_s23 = scalar_lea.vmem %s30_s22, 2048  ;;  %p417_p1 = scmp.lt.s32.totalorder %s30_s22, %s30_s22 }
   0x5   :  { %p413_p0 = scmp.ne.s32.totalorder %s30_s22, %s412_s23  ;;  %p418_p2 = scmp.lt.s32.totalorder %s412_s23, %s412_s23 }
   0x7   :  { %p419_p3 = por %p418_p2, %p417_p1 }
   0x9   :  { %p420_p4 = pnand %p419_p3, %p413_p0 }
   0xb   :  { %423 = shalt.err (!%p420_p4)
}
   0xc   :  { %s491_s24 = smov 128   ;;  %s492_s25 = smov 8  }
   0xd   :  { %35 = dma.hbm_to_vmem [thread:$0]  %s589_s1, 2048, %s30_s22, [#allocation7], %s491_s24, %s491_s24, %s492_s25  }
   0xe   :  { %s493_s28 = smov [#allocation3]   ;;  %s494_s30 = smov [#allocation8]  }
   0xf   :  { %s20_s29 = sshll.u32 %s493_s28, 4  ;;  %s41_s7 = sshll.u32 %s494_s30, 4  ;;  %s21_s29 = int_to_ptr.vmem [resolvable:$true] %s20_s29  ;;  %s42_s7 = int_to_ptr.vmem [resolvable:$true] %s41_s7 }
  0x10   :  { %s432_s8 = scalar_lea.vmem %s21_s29, 128  ;;  %p437_p6 = scmp.lt.s32.totalorder %s21_s29, %s21_s29 }
  0x11   :  { %p433_p5 = scmp.ne.s32.totalorder %s21_s29, %s432_s8  ;;  %p438_p7 = scmp.lt.s32.totalorder %s432_s8, %s432_s8 }
  0x13   :  { %p439_p8 = por %p438_p7, %p437_p6 }
  0x15   :  { %p440_p9 = pnand %p439_p8, %p433_p5 }
  0x17   :  { %443 = shalt.err (!%p440_p9)
}
  0x18   :  { %23 = dma.hbm_to_vmem [thread:$0]  %s588_s0, 128, %s21_s29, [#allocation4]  }
  0x19   :  { %s452_s11 = scalar_lea.vmem %s42_s7, 2048  ;;  %p457_p11 = scmp.lt.s32.totalorder %s42_s7, %s42_s7 }
  0x1a   :  { %p453_p10 = scmp.ne.s32.totalorder %s42_s7, %s452_s11  ;;  %p458_p12 = scmp.lt.s32.totalorder %s452_s11, %s452_s11 }
  0x1c   :  { %p459_p13 = por %p458_p12, %p457_p11 }
  0x1e   :  { %p460_p0 = pnand %p459_p13, %p453_p10 }
  0x20   :  { %463 = shalt.err (!%p460_p0)
}
  0x21   :  { %47 = dma.hbm_to_vmem [thread:$0]  %s590_s2, 2048, %s42_s7, [#allocation7], %s491_s24, %s491_s24, %s492_s25  }
  0x22   :  { %484 = dma.done.wait [#allocation4], 128  }
  0x23   :  { %485 = vsyncadd [#allocation4], 4294967168 }
  0x24   :  { %486 = dma.done.wait [#allocation7], 4096  }
  0x25   :  { %487 = vsyncadd [#allocation7], 4294963200  ;;  %v495_v0 = vmov 0.0   ;;  %vm496_vm0 = vmmov 0   ;;  %v110_v1 = vld [vmem:[#allocation8 + $0x78] sm:$0xff]  ;;  %v109_v3 = vld [vmem:[#allocation8 + $0x70] sm:$0xff] }
  0x26   :  { %326 = vmatprep.subr.mxu0 %v495_v0  ;;  %361 = vmatprep.subr.mxu1 %v495_v0  ;;  %v93_v2 = vld [vmem:[#allocation6 + $0x78] sm:$0xff]  ;;  %v92_v4 = vld [vmem:[#allocation6 + $0x70] sm:$0xff]  ;;  %v108_v5 = vld [vmem:[#allocation8 + $0x68] sm:$0xff]  ;;  %s497_s16 = smov [#allocation9]  }
  0x27   :  { %358 = vmatprep.mubr.msk.f32.mxu0 %vm496_vm0, %v495_v0  ;;  %393 = vmatprep.mubr.msk.f32.mxu1 %vm496_vm0, %v495_v0  ;;  %v91_v6 = vld [vmem:[#allocation6 + $0x68] sm:$0xff]  ;;  %v107_v7 = vld [vmem:[#allocation8 + $0x60] sm:$0xff]  ;;  %v106_v9 = vld [vmem:[#allocation8 + $0x58] sm:$0xff]  ;;  %s279_s17 = sshll.u32 %s497_s16, 4  ;;  %s280_s17 = int_to_ptr.vmem [resolvable:$true] %s279_s17 }
  0x28   :  { %327 = vmatpush3.xpose.msra.mxu0 %v110_v1  ;;  %362 = vmatpush3.xpose.msra.mxu1 %v93_v2  ;;  %v90_v8 = vld [vmem:[#allocation6 + $0x60] sm:$0xff]  ;;  %v89_v10 = vld [vmem:[#allocation6 + $0x58] sm:$0xff]  ;;  %v105_v11 = vld [vmem:[#allocation8 + $0x50] sm:$0xff]  ;;  %s464_s18 = scalar_lea.vmem %s280_s17, 128  ;;  %p469_p2 = scmp.lt.s32.totalorder %s280_s17, %s280_s17 }
  0x29   :  { %328 = vmatprep.subr.mxu0 %v495_v0  ;;  %363 = vmatprep.subr.mxu1 %v495_v0  ;;  %v88_v12 = vld [vmem:[#allocation6 + $0x50] sm:$0xff]  ;;  %v104_v13 = vld [vmem:[#allocation8 + $0x48] sm:$0xff]  ;;  %v103_v15 = vld [vmem:[#allocation8 + $0x40] sm:$0xff]  ;;  %p465_p1 = scmp.ne.s32.totalorder %s280_s17, %s464_s18  ;;  %p470_p3 = scmp.lt.s32.totalorder %s464_s18, %s464_s18 }
  0x2a   :  { %v87_v14 = vld [vmem:[#allocation6 + $0x48] sm:$0xff]  ;;  %v86_v16 = vld [vmem:[#allocation6 + $0x40] sm:$0xff]  ;;  %v102_v17 = vld [vmem:[#allocation8 + $0x38] sm:$0xff] }
  0x2b   :  { %v85_v18 = vld [vmem:[#allocation6 + $0x38] sm:$0xff]  ;;  %v101_v19 = vld [vmem:[#allocation8 + $0x30] sm:$0xff]  ;;  %v100_v21 = vld [vmem:[#allocation8 + $0x28] sm:$0xff]  ;;  %p471_p4 = por %p470_p3, %p469_p2 }
  0x2c   :  { %329 = vmatpush3.xpose.msra.mxu0 %v109_v3  ;;  %364 = vmatpush3.xpose.msra.mxu1 %v92_v4  ;;  %v84_v20 = vld [vmem:[#allocation6 + $0x30] sm:$0xff]  ;;  %v83_v22 = vld [vmem:[#allocation6 + $0x28] sm:$0xff]  ;;  %v99_v23 = vld [vmem:[#allocation8 + $0x20] sm:$0xff] }
  0x2d   :  { %330 = vmatprep.subr.mxu0 %v495_v0  ;;  %365 = vmatprep.subr.mxu1 %v495_v0  ;;  %v82_v24 = vld [vmem:[#allocation6 + $0x20] sm:$0xff]  ;;  %v98_v25 = vld [vmem:[#allocation8 + $0x18] sm:$0xff]  ;;  %v97_v27 = vld [vmem:[#allocation8 + $0x10] sm:$0xff]  ;;  %p472_p5 = pnand %p471_p4, %p465_p1 }
  0x2e   :  { %v81_v26 = vld [vmem:[#allocation6 + $0x18] sm:$0xff]  ;;  %v80_v28 = vld [vmem:[#allocation6 + $0x10] sm:$0xff]  ;;  %v96_v29 = vld [vmem:[#allocation8 + $0x8] sm:$0xff] }
  0x2f   :  { %v79_v30 = vld [vmem:[#allocation6 + $0x8] sm:$0xff]  ;;  %v68_v31 = vld [vmem:[#allocation3] sm:$0xff]  ;;  %v95_v33 = vld [vmem:[#allocation8] sm:$0xff] }
  0x30   :  { %331 = vmatpush3.xpose.msra.mxu0 %v108_v5  ;;  %366 = vmatpush3.xpose.msra.mxu1 %v91_v6  ;;  %v289_v32 = vld [vmem:[%s591_s3] ss:$0 sm:$0xff]  ;;  %v78_v34 = vld [vmem:[#allocation6] sm:$0xff] }
  0x31   :  { %332 = vmatprep.subr.mxu0 %v495_v0  ;;  %367 = vmatprep.subr.mxu1 %v495_v0  ;;  %v76_v35 = vmul.f32 %v289_v32, %v68_v31  ;;  %v290_v36 = vld [vmem:[%s592_s4] ss:$0 sm:$0xff] }
  0x32   :  { %v291_v40 = vld [vmem:[%s593_s5] ss:$0 sm:$0xff] }
  0x34   :  { %333 = vmatpush3.xpose.msra.mxu0 %v107_v7  ;;  %368 = vmatpush3.xpose.msra.mxu1 %v90_v8 }
  0x35   :  { %334 = vmatprep.subr.mxu0 %v495_v0  ;;  %369 = vmatprep.subr.mxu1 %v495_v0 }
  0x38   :  { %335 = vmatpush3.xpose.msra.mxu0 %v106_v9  ;;  %370 = vmatpush3.xpose.msra.mxu1 %v89_v10 }
  0x39   :  { %336 = vmatprep.subr.mxu0 %v495_v0  ;;  %371 = vmatprep.subr.mxu1 %v495_v0 }
  0x3c   :  { %337 = vmatpush3.xpose.msra.mxu0 %v105_v11  ;;  %372 = vmatpush3.xpose.msra.mxu1 %v88_v12 }
  0x3d   :  { %338 = vmatprep.subr.mxu0 %v495_v0  ;;  %373 = vmatprep.subr.mxu1 %v495_v0 }
  0x40   :  { %339 = vmatpush3.xpose.msra.mxu0 %v104_v13  ;;  %374 = vmatpush3.xpose.msra.mxu1 %v87_v14 }
  0x41   :  { %340 = vmatprep.subr.mxu0 %v495_v0  ;;  %375 = vmatprep.subr.mxu1 %v495_v0 }
  0x44   :  { %341 = vmatpush3.xpose.msra.mxu0 %v103_v15  ;;  %376 = vmatpush3.xpose.msra.mxu1 %v86_v16 }
  0x45   :  { %342 = vmatprep.subr.mxu0 %v495_v0  ;;  %377 = vmatprep.subr.mxu1 %v495_v0 }
  0x48   :  { %343 = vmatpush3.xpose.msra.mxu0 %v102_v17  ;;  %378 = vmatpush3.xpose.msra.mxu1 %v85_v18 }
  0x49   :  { %344 = vmatprep.subr.mxu0 %v495_v0  ;;  %379 = vmatprep.subr.mxu1 %v495_v0 }
  0x4c   :  { %345 = vmatpush3.xpose.msra.mxu0 %v101_v19  ;;  %380 = vmatpush3.xpose.msra.mxu1 %v84_v20 }
  0x4d   :  { %346 = vmatprep.subr.mxu0 %v495_v0  ;;  %381 = vmatprep.subr.mxu1 %v495_v0 }
  0x50   :  { %347 = vmatpush3.xpose.msra.mxu0 %v100_v21  ;;  %382 = vmatpush3.xpose.msra.mxu1 %v83_v22 }
  0x51   :  { %348 = vmatprep.subr.mxu0 %v495_v0  ;;  %383 = vmatprep.subr.mxu1 %v495_v0 }
  0x54   :  { %349 = vmatpush3.xpose.msra.mxu0 %v99_v23  ;;  %384 = vmatpush3.xpose.msra.mxu1 %v82_v24 }
  0x55   :  { %350 = vmatprep.subr.mxu0 %v495_v0  ;;  %385 = vmatprep.subr.mxu1 %v495_v0 }
  0x58   :  { %351 = vmatpush3.xpose.msra.mxu0 %v98_v25  ;;  %386 = vmatpush3.xpose.msra.mxu1 %v81_v26 }
  0x59   :  { %352 = vmatprep.subr.mxu0 %v495_v0  ;;  %387 = vmatprep.subr.mxu1 %v495_v0 }
  0x5c   :  { %353 = vmatpush3.xpose.msra.mxu0 %v97_v27  ;;  %388 = vmatpush3.xpose.msra.mxu1 %v80_v28 }
  0x5d   :  { %354 = vmatprep.subr.mxu0 %v495_v0  ;;  %389 = vmatprep.subr.mxu1 %v495_v0 }
  0x60   :  { %355 = vmatpush3.xpose.msra.mxu0 %v96_v29  ;;  %390 = vmatpush3.xpose.msra.mxu1 %v79_v30 }
  0x61   :  { %356 = vmatprep.subr.mxu0 %v495_v0  ;;  %391 = vmatprep.subr.mxu1 %v495_v0 }
  0x64   :  { %357 = vmatpush3.xpose.msra.mxu0 %v95_v33  ;;  %392 = vmatpush3.xpose.msra.mxu1 %v78_v34 }
  0x67   :  { %359 = vmatmul.mubr.f32.vlgmr.msra.gmra.mxu0 %v76_v35  ;;  %394 = vmatmul.mubr.f32.vlgmr.msra.gmra.mxu1 %v68_v31 }
 0x127   :  { %v177_v37 = vpop.f32.mrf.mxu0  ;;  %v254_v38 = vpop.f32.mrf.mxu1 }
 0x128   :  { %v187_v39 = vmul.f32 %v290_v36, %v177_v37 }
 0x129   :  { %v360_v41 = vpop.f32.mrf.mxu0  ;;  %v395_v42 = vpop.f32.mrf.mxu1 }
 0x12a   :  { %v255_v43 = vadd.f32 %v254_v38, %v187_v39 }
 0x12c   :  { %v271_v44 = vadd.f32 %v291_v40, %v255_v43 }
 0x12e   :  { %272 = vst [vmem:[#allocation9] sm:$0xff] %v271_v44 }
 0x12f   :  { %475 = shalt.err (!%p472_p5)
}
 0x130   :  { %282 = dma.vmem_to_hbm [thread:$0]  %s280_s17, 128, %s594_s6, [#allocation5]  }
 0x131   :  { %488 = dma.done.wait [#allocation5], 128  }
 0x132   :  { %489 = vsyncadd [#allocation5], 4294967168 }
 0x133   :  { %286 = vsyncpa [#allocation4], 1 }
 0x134   :  { %287 = vsyncpa [#allocation7], 1 }
 0x135   :  { %288 = vsyncpa [#allocation5], 1 }

</bundles_post_ra>
